<compile_context>
chip_gen: v7x
topology: tpu7x:2x2x1
jax: 0.10.0
libtpu: 0.0.40
codegen_flags: <defaults>
</compile_context>

<pallas_src>
import functools

import jax
import jax.numpy as jnp
from jax import lax
from jax.experimental import pallas as pl
from jax.experimental.pallas import tpu as pltpu


def _round_up(x, m):
    return -(-x // m) * m


def _vmem_capacity_bytes():
    """Trace-time VMEM capacity query (falls back to 128 MiB = v5e/v6e)."""
    try:
        info = pltpu.get_tpu_info()
        cap = getattr(info, "vmem_capacity_bytes", None)
        if cap:
            return int(cap)
    except Exception:
        pass
    return 128 << 20


def _corrcoeff_mse_kernel(yp_ref, yt_ref, pcc_ref, sq_ref, *, total_b, tile_b, need_mask):
    """One grid step: reduce a (tile_b, N) block to two scalars.

      pcc_ref[0, :, :] = sum over valid rows of the block of the per-row Pearson
                         correlation coefficient (broadcast to a lane-dense tile)
      sq_ref[0, :, :]  = sum over valid rows/cols of (y_pred - y_true)**2

    Rows beyond the true batch size (ragged last block) are masked BEFORE the
    reduction; the mask is only compiled in when the tiling is actually ragged.
    """
    yp = yp_ref[...].astype(jnp.float32)   # (tile_b, N)
    yt = yt_ref[...].astype(jnp.float32)   # (tile_b, N)

    # Center along the feature axis (dim=1 in the PyTorch module).
    yt_c = yt - jnp.mean(yt, axis=1, keepdims=True)
    yp_c = yp - jnp.mean(yp, axis=1, keepdims=True)

    num = jnp.sum(yt_c * yp_c, axis=1, keepdims=True)         # (tile_b, 1)
    sp = jnp.sum(yp_c * yp_c, axis=1, keepdims=True)          # (tile_b, 1)
    st = jnp.sum(yt_c * yt_c, axis=1, keepdims=True)          # (tile_b, 1)
    # rsqrt: single EUP op (idle slot) instead of sqrt + f32 divide.
    pcc = num * lax.rsqrt(sp * st)

    # Direct diff^2 path kept for numerical accuracy when y_pred ~= y_true.
    diff = yp - yt
    sq = jnp.sum(diff * diff, axis=1, keepdims=True)          # (tile_b, 1)

    if need_mask:
        # Ragged last block: out-of-bounds rows contain garbage from the DMA
        # buffer; select them to 0 before reducing (jnp.where, so NaN/Inf safe).
        i = pl.program_id(0)
        row = i * tile_b + lax.broadcasted_iota(jnp.int32, (tile_b, 1), 0)
        valid = row < total_b
        pcc = jnp.where(valid, pcc, 0.0)
        sq = jnp.where(valid, sq, 0.0)

    # In-block reduction to scalars; write each as one lane-dense (8,128) tile
    # (a single unmasked vector store per output per grid step).
    pcc_ref[...] = jnp.broadcast_to(jnp.sum(pcc), (1, 8, 128))
    sq_ref[...] = jnp.broadcast_to(jnp.sum(sq), (1, 8, 128))


def _pick_tile_b(B, N, itemsize, vmem_cap):
    """Choose (tile_b, num_blocks) without any host-side padding.

    Block size is chosen in BYTES from a generation-aware VMEM live-set budget
    (2 inputs x 2 pipeline buffers + ~6 f32 intermediates of the block), then
    rounded to the sublane multiple.  Problems >= ~2 MiB per input always get
    >= 2 (up to 4) grid steps so pipelining / megacore sharding engage.
    """
    sub = 8 if itemsize >= 4 else (16 if itemsize == 2 else 32)   # sublane multiple
    row_bytes = max(1, N * itemsize)

    if vmem_cap >= (100 << 20):
        # v5e / v6e: 128 MiB physical VMEM.
        block_cap = 8 << 20
        live_budget = 80 << 20
    else:
        # v7x: 64 MiB per-TC physical VMEM.
        block_cap = 4 << 20
        live_budget = 36 << 20

    # live ~= 4*block (double-buffered inputs) + 6 * f32 block intermediates.
    denom = 4 + (24 // max(1, itemsize))
    max_block_bytes = max(row_bytes * sub, min(block_cap, live_budget // denom))
    max_tile = max(sub, (max_block_bytes // row_bytes) // sub * sub)

    total_bytes = B * row_bytes
    num_blocks = pl.cdiv(B, max_tile)

    # Avoid the single-block "fast path" for problems big enough to benefit:
    # >=2 (ideally 4) grid steps -> DMA/compute overlap + v7x 2-TC sharding.
    if num_blocks < 4 and total_bytes >= (2 << 20) and B >= 4 * sub:
        num_blocks = max(num_blocks,
                         min(4, B // sub, max(2, total_bytes // (1 << 20))))

    if num_blocks <= 1:
        return B, 1            # single block exactly equal to the full array
    tile_b = _round_up(pl.cdiv(B, num_blocks), sub)
    num_blocks = pl.cdiv(B, tile_b)
    if num_blocks <= 1:
        return B, 1
    return tile_b, num_blocks


def corrcoeff_mse_loss(y_pred, y_true, mse_weight=1.0, pcc_weight=1.0):
    """Pallas implementation of CorrCoeffMSELoss.forward for 2-D (B, N) inputs."""
    assert y_pred.shape == y_true.shape and y_pred.ndim == 2
    B, N = y_pred.shape
    itemsize = jnp.dtype(y_pred.dtype).itemsize

    vmem_cap = _vmem_capacity_bytes()
    tile_b, num_blocks = _pick_tile_b(B, N, itemsize, vmem_cap)
    need_mask = (tile_b * num_blocks != B)

    kernel = functools.partial(_corrcoeff_mse_kernel,
                               total_b=B, tile_b=tile_b, need_mask=need_mask)

    # VMEM budget in f32 terms: double-buffered inputs + f32 intermediates + slack.
    block_bytes = tile_b * N * itemsize
    f32_block = tile_b * N * 4
    live = 4 * block_bytes + 6 * f32_block + (2 << 20)
    cap = (100 << 20) if vmem_cap >= (100 << 20) else (48 << 20)
    vmem_limit = int(min(cap, max(32 << 20, live)))

    pcc_part, sq_part = pl.pallas_call(
        kernel,
        out_shape=(
            jax.ShapeDtypeStruct((num_blocks, 8, 128), jnp.float32),
            jax.ShapeDtypeStruct((num_blocks, 8, 128), jnp.float32),
        ),
        grid_spec=pltpu.PrefetchScalarGridSpec(
            num_scalar_prefetch=0,
            grid=(num_blocks,),
            in_specs=[
                pl.BlockSpec((tile_b, N), lambda i: (i, 0)),
                pl.BlockSpec((tile_b, N), lambda i: (i, 0)),
            ],
            out_specs=[
                pl.BlockSpec((1, 8, 128), lambda i: (i, 0, 0)),
                pl.BlockSpec((1, 8, 128), lambda i: (i, 0, 0)),
            ],
        ),
        compiler_params=pltpu.CompilerParams(
            dimension_semantics=("parallel",),   # independent blocks -> megacore on v7x
            vmem_limit_bytes=vmem_limit,
        ),
    )(y_pred, y_true)

    # Tiny O(num_blocks) final reduction + weighted combine outside the kernel.
    pcc_sum = jnp.sum(pcc_part[:, 0, 0])
    sq_sum = jnp.sum(sq_part[:, 0, 0])
    pcc_loss = 1.0 - pcc_sum / jnp.float32(B)
    mse_loss = sq_sum / jnp.float32(B * N)
    return jnp.float32(pcc_weight) * pcc_loss + jnp.float32(mse_weight) * mse_loss


def _reference(y_pred, y_true, mse_weight=1.0, pcc_weight=1.0):
    y_pred = y_pred.astype(jnp.float32)
    y_true = y_true.astype(jnp.float32)
    y_true_ = y_true - jnp.mean(y_true, axis=1, keepdims=True)
    y_pred_ = y_pred - jnp.mean(y_pred, axis=1, keepdims=True)
    num = jnp.sum(y_true_ * y_pred_, axis=1, keepdims=True)
    den = jnp.sqrt(jnp.sum(y_pred_ ** 2, axis=1, keepdims=True) *
                   jnp.sum(y_true_ ** 2, axis=1, keepdims=True))
    pcc_loss = 1.0 - jnp.mean(num / den)
    mse = jnp.mean((y_pred - y_true) ** 2)
    return pcc_weight * pcc_loss + mse_weight * mse


if __name__ == "__main__":
    key = jax.random.PRNGKey(0)

    # Small shape consistent with the module's (batch, features) forward.
    k1, k2 = jax.random.split(key)
    B, N = 16, 256
    y_pred = jax.random.normal(k1, (B, N), dtype=jnp.float32)
    y_true = jax.random.normal(k2, (B, N), dtype=jnp.float32)
    loss = jax.block_until_ready(corrcoeff_mse_loss(y_pred, y_true, 1.0, 1.0))
    ref = _reference(y_pred, y_true, 1.0, 1.0)
    assert jnp.allclose(loss, ref, rtol=1e-5, atol=1e-5), (loss, ref)

    # Tiny batch not a multiple of the sublane tile (single full-array block).
    k3, k4 = jax.random.split(k2)
    B2, N2 = 13, 128
    yp2 = jax.random.normal(k3, (B2, N2), dtype=jnp.float32)
    yt2 = jax.random.normal(k4, (B2, N2), dtype=jnp.float32)
    loss2 = jax.block_until_ready(corrcoeff_mse_loss(yp2, yt2, 0.7, 1.3))
    ref2 = _reference(yp2, yt2, 0.7, 1.3)
    assert jnp.allclose(loss2, ref2, rtol=1e-5, atol=1e-5), (loss2, ref2)

    # Ragged multi-block path (no host padding): exercises the in-kernel row
    # mask on the last block and the multi-step "parallel" grid.
    k5, k6 = jax.random.split(k4)
    B3, N3 = 1037, 512
    yp3 = jax.random.normal(k5, (B3, N3), dtype=jnp.float32)
    yt3 = 0.5 * yp3 + 0.5 * jax.random.normal(k6, (B3, N3), dtype=jnp.float32)
    loss3 = jax.block_until_ready(corrcoeff_mse_loss(yp3, yt3, 1.0, 1.0))
    ref3 = _reference(yp3, yt3, 1.0, 1.0)
    assert jnp.allclose(loss3, ref3, rtol=1e-4, atol=1e-5), (loss3, ref3)

    print("KERNEL_OK")
</pallas_src>

<mosaic_0001>
module attributes {stable_mosaic.version = 11 : i64} {
  func.func @_corrcoeff_mse_kernel(%arg0: i32, %arg1: memref<16x256xf32, #tpu.memory_space<vmem>>, %arg2: memref<16x256xf32, #tpu.memory_space<vmem>>, %arg3: memref<1x8x128xf32, #tpu.memory_space<vmem>>, %arg4: memref<1x8x128xf32, #tpu.memory_space<vmem>>) attributes {dimension_semantics = [#tpu.dimension_semantics<parallel>], iteration_bounds = array<i64: 1>, scalar_prefetch = 0 : i64, scratch_operands = 0 : i64, tpu.core_type = #tpu.core_type<tc>, window_params = [{transform_indices = @transform_0, window_bounds = array<i64: 16, 256>}, {transform_indices = @transform_1, window_bounds = array<i64: 16, 256>}, {transform_indices = @transform_2, window_bounds = array<i64: 1, 8, 128>}, {transform_indices = @transform_3, window_bounds = array<i64: 1, 8, 128>}]} {
    %c0 = arith.constant 0 : index
    %c0_0 = arith.constant 0 : index
    %0 = vector.load %arg1[%c0, %c0_0] : memref<16x256xf32, #tpu.memory_space<vmem>>, vector<16x256xf32>
    %c0_1 = arith.constant 0 : index
    %c0_2 = arith.constant 0 : index
    %1 = vector.load %arg2[%c0_1, %c0_2] : memref<16x256xf32, #tpu.memory_space<vmem>>, vector<16x256xf32>
    %cst = arith.constant dense<0.000000e+00> : vector<16xf32>
    %2 = vector.multi_reduction <add>, %1, %cst [1] : vector<16x256xf32> to vector<16xf32>
    %3 = vector.shape_cast %2 : vector<16xf32> to vector<16x1xf32>
    %cst_3 = arith.constant 2.560000e+02 : f32
    %4 = vector.broadcast %cst_3 : f32 to vector<16x1xf32>
    %5 = arith.divf %3, %4 : vector<16x1xf32>
    %6 = vector.broadcast %5 : vector<16x1xf32> to vector<16x256xf32>
    %7 = arith.subf %1, %6 : vector<16x256xf32>
    %cst_4 = arith.constant dense<0.000000e+00> : vector<16xf32>
    %8 = vector.multi_reduction <add>, %0, %cst_4 [1] : vector<16x256xf32> to vector<16xf32>
    %9 = vector.shape_cast %8 : vector<16xf32> to vector<16x1xf32>
    %cst_5 = arith.constant 2.560000e+02 : f32
    %10 = vector.broadcast %cst_5 : f32 to vector<16x1xf32>
    %11 = arith.divf %9, %10 : vector<16x1xf32>
    %12 = vector.broadcast %11 : vector<16x1xf32> to vector<16x256xf32>
    %13 = arith.subf %0, %12 : vector<16x256xf32>
    %14 = arith.mulf %7, %13 : vector<16x256xf32>
    %cst_6 = arith.constant dense<0.000000e+00> : vector<16xf32>
    %15 = vector.multi_reduction <add>, %14, %cst_6 [1] : vector<16x256xf32> to vector<16xf32>
    %16 = vector.shape_cast %15 : vector<16xf32> to vector<16x1xf32>
    %17 = arith.mulf %13, %13 : vector<16x256xf32>
    %cst_7 = arith.constant dense<0.000000e+00> : vector<16xf32>
    %18 = vector.multi_reduction <add>, %17, %cst_7 [1] : vector<16x256xf32> to vector<16xf32>
    %19 = vector.shape_cast %18 : vector<16xf32> to vector<16x1xf32>
    %20 = arith.mulf %7, %7 : vector<16x256xf32>
    %cst_8 = arith.constant dense<0.000000e+00> : vector<16xf32>
    %21 = vector.multi_reduction <add>, %20, %cst_8 [1] : vector<16x256xf32> to vector<16xf32>
    %22 = vector.shape_cast %21 : vector<16xf32> to vector<16x1xf32>
    %23 = arith.mulf %19, %22 : vector<16x1xf32>
    %24 = math.rsqrt %23 : vector<16x1xf32>
    %25 = arith.mulf %16, %24 : vector<16x1xf32>
    %26 = arith.subf %0, %1 : vector<16x256xf32>
    %27 = arith.mulf %26, %26 : vector<16x256xf32>
    %cst_9 = arith.constant dense<0.000000e+00> : vector<16xf32>
    %28 = vector.multi_reduction <add>, %27, %cst_9 [1] : vector<16x256xf32> to vector<16xf32>
    %29 = vector.shape_cast %28 : vector<16xf32> to vector<16x1xf32>
    %30 = vector.shape_cast %25 : vector<16x1xf32> to vector<1x16x1xf32>
    %cst_10 = arith.constant dense<0.000000e+00> : vector<1xf32>
    %31 = vector.multi_reduction <add>, %30, %cst_10 [1, 2] : vector<1x16x1xf32> to vector<1xf32>
    %32 = vector.shape_cast %31 : vector<1xf32> to vector<1x1x1xf32>
    %33 = vector.extract %32[0, 0, 0] : f32 from vector<1x1x1xf32>
    %34 = vector.broadcast %33 : f32 to vector<1x8x128xf32>
    %c0_11 = arith.constant 0 : index
    %c0_12 = arith.constant 0 : index
    %c0_13 = arith.constant 0 : index
    %35 = vector.load %arg3[%c0_11, %c0_12, %c0_13] : memref<1x8x128xf32, #tpu.memory_space<vmem>>, vector<1x8x128xf32>
    tpu.vector_store %arg3[%c0_11, %c0_12, %c0_13], %34 {strides = array<i32>} : memref<1x8x128xf32, #tpu.memory_space<vmem>>, vector<1x8x128xf32>,
    %36 = vector.shape_cast %29 : vector<16x1xf32> to vector<1x16x1xf32>
    %cst_14 = arith.constant dense<0.000000e+00> : vector<1xf32>
    %37 = vector.multi_reduction <add>, %36, %cst_14 [1, 2] : vector<1x16x1xf32> to vector<1xf32>
    %38 = vector.shape_cast %37 : vector<1xf32> to vector<1x1x1xf32>
    %39 = vector.extract %38[0, 0, 0] : f32 from vector<1x1x1xf32>
    %40 = vector.broadcast %39 : f32 to vector<1x8x128xf32>
    %c0_15 = arith.constant 0 : index
    %c0_16 = arith.constant 0 : index
    %c0_17 = arith.constant 0 : index
    %41 = vector.load %arg4[%c0_15, %c0_16, %c0_17] : memref<1x8x128xf32, #tpu.memory_space<vmem>>, vector<1x8x128xf32>
    tpu.vector_store %arg4[%c0_15, %c0_16, %c0_17], %40 {strides = array<i32>} : memref<1x8x128xf32, #tpu.memory_space<vmem>>, vector<1x8x128xf32>,
    return
  }
  func.func @transform_0(%arg0: i32) -> (i32, i32) {
    %c0_i32 = arith.constant 0 : i32
    %c0_i32_0 = arith.constant 0 : i32
    return %arg0, %c0_i32 : i32, i32
  }
  func.func @transform_1(%arg0: i32) -> (i32, i32) {
    %c0_i32 = arith.constant 0 : i32
    %c0_i32_0 = arith.constant 0 : i32
    return %arg0, %c0_i32 : i32, i32
  }
  func.func @transform_2(%arg0: i32) -> (i32, i32, i32) {
    %c0_i32 = arith.constant 0 : i32
    %c0_i32_0 = arith.constant 0 : i32
    %c0_i32_1 = arith.constant 0 : i32
    return %arg0, %c0_i32, %c0_i32_0 : i32, i32, i32
  }
  func.func @transform_3(%arg0: i32) -> (i32, i32, i32) {
    %c0_i32 = arith.constant 0 : i32
    %c0_i32_0 = arith.constant 0 : i32
    %c0_i32_1 = arith.constant 0 : i32
    return %arg0, %c0_i32, %c0_i32_0 : i32, i32, i32
  }
}

</mosaic_0001>

<bundles_post_ra>
// kernel: tpu_custom_call.1
= control target key start
LH: loop header
LB: loop body
LE: loop exit
PB: predicated region body
PF: predicated region fallthrough
CT: control target
= control target key end

     0   :  { %9 = vsyncpa [#allocation3], 0  ;;  %s376_s0 = inlined_call_operand.hbm [shape: f32[16,256], index: 0, kind: input, shape index: {}]   ;;  %s377_s1 = inlined_call_operand.hbm [shape: f32[16,256], index: 1, kind: input, shape index: {}]   ;;  %s378_s2 = inlined_call_operand.hbm [shape: f32[1,8,128], index: 2, kind: output, shape index: {0}]   ;;  %s379_s3 = inlined_call_operand.hbm [shape: f32[1,8,128], index: 3, kind: output, shape index: {1}]  }
   0x1   :  { %10 = vsyncpa [#allocation6], 0 }
   0x2   :  { %11 = vsyncpa [#allocation4], 0 }
   0x3   :  { %12 = vsyncpa [#allocation9], 0  ;;  %s295_s12 = smov [#allocation2]   ;;  %s199_s16 = scalar_lea.hbm %s376_s0, 512 }
   0x4   :  { %s18_s13 = sshll.u32 %s295_s12, 4  ;;  %p200_p0 = scmp.ne.s32.totalorder %s376_s0, %s199_s16  ;;  %s19_s13 = int_to_ptr.vmem [resolvable:$true] %s18_s13 }
   0x5   :  { %p203_p1 = scmp.lt.u32.totalorder %s199_s16, %s376_s0 }
   0x7   :  { %p205_p2 = pnand %p203_p1, %p200_p0 }
   0x9   :  { %208 = shalt.err (!%p205_p2)
}
   0xa   :  { %s209_s21 = scalar_lea.vmem %s19_s13, 512  ;;  %p214_p4 = scmp.lt.s32.totalorder %s19_s13, %s19_s13 }
   0xb   :  { %p210_p3 = scmp.ne.s32.totalorder %s19_s13, %s209_s21  ;;  %p215_p5 = scmp.lt.s32.totalorder %s209_s21, %s209_s21 }
   0xd   :  { %p216_p6 = por %p215_p5, %p214_p4 }
   0xf   :  { %p217_p7 = pnand %p216_p6, %p210_p3 }
  0x11   :  { %220 = shalt.err (!%p217_p7)
}
  0x12   :  { %s296_s22 = smov 256   ;;  %s297_s23 = smov 16  }
  0x13   :  { %24 = dma.hbm_to_vmem [thread:$0]  %s376_s0, 512, %s19_s13, [#allocation3], %s296_s22, %s296_s22, %s297_s23  }
  0x14   :  { %s298_s26 = smov [#allocation5]   ;;  %s221_s30 = scalar_lea.hbm %s377_s1, 512 }
  0x15   :  { %s30_s27 = sshll.u32 %s298_s26, 4  ;;  %p222_p8 = scmp.ne.s32.totalorder %s377_s1, %s221_s30  ;;  %s31_s27 = int_to_ptr.vmem [resolvable:$true] %s30_s27 }
  0x16   :  { %p225_p9 = scmp.lt.u32.totalorder %s221_s30, %s377_s1 }
  0x18   :  { %p227_p10 = pnand %p225_p9, %p222_p8 }
  0x1a   :  { %230 = shalt.err (!%p227_p10)
}
  0x1b   :  { %s231_s8 = scalar_lea.vmem %s31_s27, 512  ;;  %p236_p12 = scmp.lt.s32.totalorder %s31_s27, %s31_s27 }
  0x1c   :  { %p232_p11 = scmp.ne.s32.totalorder %s31_s27, %s231_s8  ;;  %p237_p13 = scmp.lt.s32.totalorder %s231_s8, %s231_s8 }
  0x1e   :  { %p238_p0 = por %p237_p13, %p236_p12 }
  0x20   :  { %p239_p1 = pnand %p238_p0, %p232_p11 }
  0x22   :  { %242 = shalt.err (!%p239_p1)
}
  0x23   :  { %36 = dma.hbm_to_vmem [thread:$0]  %s377_s1, 512, %s31_s27, [#allocation6], %s296_s22, %s296_s22, %s297_s23  }
  0x24   :  { %287 = dma.done.wait [#allocation3], 512  }
  0x25   :  { %288 = vsyncadd [#allocation3], 4294966784 }
  0x26   :  { %289 = dma.done.wait [#allocation6], 512  }
  0x27   :  { %290 = vsyncadd [#allocation6], 4294966784  ;;  %v47_v0 = vld [vmem:[#allocation5] sm:$0xff]  ;;  %v48_v1 = vld [vmem:[#allocation5 + $0x8] sm:$0xff]  ;;  %vm126_vm0 = vcmask 7168   ;;  %s299_s1 = smov [#allocation7]  }
  0x28   :  { %v43_v2 = vld [vmem:[#allocation2] sm:$0xff]  ;;  %v51_v3 = vadd.f32 %v48_v1, %v47_v0  ;;  %v44_v4 = vld [vmem:[#allocation2 + $0x8] sm:$0xff]  ;;  %v49_v5 = vld [vmem:[#allocation5 + $0x10] sm:$0xff]  ;;  %s161_s10 = sshll.u32 %s299_s1, 4  ;;  %s300_s11 = smov [#allocation8]   ;;  %s162_s10 = int_to_ptr.vmem [resolvable:$true] %s161_s10 }
  0x29   :  { %v50_v6 = vld [vmem:[#allocation5 + $0x18] sm:$0xff]  ;;  %v64_v7 = vadd.f32 %v44_v4, %v43_v2  ;;  %v45_v8 = vld [vmem:[#allocation2 + $0x10] sm:$0xff]  ;;  %v112_v34 = vsub.f32 %v43_v2, %v47_v0  ;;  %v113_v35 = vsub.f32 %v44_v4, %v48_v1  ;;  %s171_s12 = sshll.u32 %s300_s11, 4  ;;  %s243_s15 = scalar_lea.vmem %s162_s10, 128  ;;  %s345_s12 = int_to_ptr.vmem [resolvable:$true] %s171_s12 }
  0x2a   :  { %v46_v9 = vld [vmem:[#allocation2 + $0x18] sm:$0xff]  ;;  %52 = vadd.xlane.f32.xlu0 %v51_v3  ;;  %v54_v10 = vadd.f32 %v50_v6, %v49_v5  ;;  %v114_v43 = vsub.f32 %v45_v8, %v49_v5  ;;  %p244_p2 = scmp.ne.s32.totalorder %s162_s10, %s243_s15  ;;  %p248_p3 = scmp.lt.s32.totalorder %s162_s10, %s162_s10 }
  0x2b   :  { %65 = vadd.xlane.f32.xlu1 %v64_v7  ;;  %v67_v11 = vadd.f32 %v46_v9, %v45_v8  ;;  %v115_v44 = vsub.f32 %v46_v9, %v50_v6  ;;  %v116_v46 = vmul.f32 %v112_v34, %v112_v34  ;;  %v117_v47 = vmul.f32 %v113_v35, %v113_v35  ;;  %p249_p4 = scmp.lt.s32.totalorder %s243_s15, %s243_s15 }
  0x2c   :  { %v118_v52 = vmul.f32 %v114_v43, %v114_v43 }
  0x2d   :  { %v120_v51 = vadd.f32 %v117_v47, %v116_v46  ;;  %v119_v53 = vmul.f32 %v115_v44, %v115_v44  ;;  %p250_p5 = por %p249_p4, %p248_p3 }
  0x2e   :  { %55 = vadd.xlane.f32.xlu0 %v54_v10 }
  0x2f   :  { %68 = vadd.xlane.f32.xlu1 %v67_v11  ;;  %v123_v55 = vadd.f32 %v119_v53, %v118_v52  ;;  %p251_p6 = pnand %p250_p5, %p244_p2 }
  0xb7   :  { %v53_v12 = vpop.xlane.xlu0 %52 }
  0xb8   :  { %v58_v13 = vmul.f32 0.00390625, %v53_v12  ;;  %v66_v14 = vpop.xlane.xlu1 %65 }
  0xb9   :  { %v70_v15 = vmul.f32 0.00390625, %v66_v14 }
  0xba   :  { %v60_v16 = vsub.f32 %v47_v0, %v58_v13  ;;  %v61_v17 = vsub.f32 %v48_v1, %v58_v13 }
  0xbb   :  { %v72_v18 = vsub.f32 %v43_v2, %v70_v15  ;;  %v73_v19 = vsub.f32 %v44_v4, %v70_v15  ;;  %v56_v20 = vpop.xlane.xlu0 %55 }
  0xbc   :  { %v59_v21 = vmul.f32 0.00390625, %v56_v20  ;;  %v69_v22 = vpop.xlane.xlu1 %68  ;;  %v96_v23 = vmul.f32 %v60_v16, %v60_v16  ;;  %v97_v24 = vmul.f32 %v61_v17, %v61_v17 }
  0xbd   :  { %v71_v25 = vmul.f32 0.00390625, %v69_v22  ;;  %v86_v26 = vmul.f32 %v72_v18, %v72_v18  ;;  %v87_v27 = vmul.f32 %v73_v19, %v73_v19  ;;  %v76_v41 = vmul.f32 %v72_v18, %v60_v16 }
  0xbe   :  { %v62_v28 = vsub.f32 %v49_v5, %v59_v21  ;;  %v63_v29 = vsub.f32 %v50_v6, %v59_v21  ;;  %v100_v33 = vadd.f32 %v97_v24, %v96_v23  ;;  %v77_v42 = vmul.f32 %v73_v19, %v61_v17 }
  0xbf   :  { %v74_v30 = vsub.f32 %v45_v8, %v71_v25  ;;  %v75_v31 = vsub.f32 %v46_v9, %v71_v25  ;;  %v90_v32 = vadd.f32 %v87_v27, %v86_v26 }
  0xc0   :  { %v98_v38 = vmul.f32 %v62_v28, %v62_v28  ;;  %v99_v39 = vmul.f32 %v63_v29, %v63_v29  ;;  %v80_v48 = vadd.f32 %v77_v42, %v76_v41 }
  0xc1   :  { %91 = vadd.xlane.f32.xlu0 %v90_v32  ;;  %v88_v36 = vmul.f32 %v74_v30, %v74_v30  ;;  %v89_v37 = vmul.f32 %v75_v31, %v75_v31  ;;  %v78_v49 = vmul.f32 %v74_v30, %v62_v28  ;;  %v79_v50 = vmul.f32 %v75_v31, %v63_v29 }
  0xc2   :  { %v103_v45 = vadd.f32 %v99_v39, %v98_v38 }
  0xc3   :  { %v93_v40 = vadd.f32 %v89_v37, %v88_v36  ;;  %v83_v54 = vadd.f32 %v79_v50, %v78_v49 }
  0xc5   :  { %101 = vadd.xlane.f32.xlu0 %v100_v33  ;;  %94 = vadd.xlane.f32.xlu1 %v93_v40 }
  0xc9   :  { %81 = vadd.xlane.f32.xlu0 %v80_v48  ;;  %104 = vadd.xlane.f32.xlu1 %v103_v45 }
  0xcd   :  { %84 = vadd.xlane.f32.xlu1 %v83_v54  ;;  %121 = vadd.xlane.f32.xlu0 %v120_v51 }
  0xd1   :  { %124 = vadd.xlane.f32.xlu1 %v123_v55 }
 0x14e   :  { %v92_v56 = vpop.xlane.xlu0 %91 }
 0x152   :  { %v102_v57 = vpop.xlane.xlu0 %101  ;;  %v95_v58 = vpop.xlane.xlu1 %94 }
 0x153   :  { %v106_v59 = vmul.f32 %v102_v57, %v92_v56 }
 0x155   :  { %195 = vrsqrt.f32 %v106_v59 }
 0x156   :  { %v82_v60 = vpop.xlane.xlu0 %81  ;;  %v105_v61 = vpop.xlane.xlu1 %104 }
 0x157   :  { %v107_v62 = vmul.f32 %v105_v61, %v95_v58 }
 0x159   :  { %197 = vrsqrt.f32 %v107_v62 }
 0x15a   :  { %v85_v63 = vpop.xlane.xlu1 %84  ;;  %v122_v0 = vpop.xlane.xlu0 %121 }
 0x15b   :  { %v141_v1 = vsel %vm126_vm0, %v122_v0, 0.0 }
 0x15e   :  { %v125_v2 = vpop.xlane.xlu1 %124 }
 0x15f   :  { %v196_v3 = vpop.eup %195  ;;  %v142_v4 = vsel %vm126_vm0, %v125_v2, 0.0 }
 0x160   :  { %v143_v5 = vadd.f32 %v142_v4, %v141_v1  ;;  %v110_v6 = vmul.f32 %v196_v3, %v82_v60 }
 0x162   :  { %144 = vadd.xlane.f32.xlu1 %v143_v5  ;;  %v127_v9 = vsel %vm126_vm0, %v110_v6, 0.0 }
 0x163   :  { %v198_v7 = vpop.eup %197 }
 0x164   :  { %v111_v8 = vmul.f32 %v198_v7, %v85_v63 }
 0x166   :  { %v128_v10 = vsel %vm126_vm0, %v111_v8, 0.0 }
 0x167   :  { %v129_v11 = vadd.f32 %v128_v10, %v127_v9 }
 0x169   :  { %130 = vadd.xlane.f32.xlu0 %v129_v11 }
 0x1ef   :  { %v145_v12 = vpop.xlane.xlu1 %144 }
 0x1f0   :  { %v146_v13 = vrot.slane %v145_v12, 4 }
 0x1f2   :  { %v147_v14 = vadd.f32 %v146_v13, %v145_v12 }
 0x1f4   :  { %v148_v15 = vrot.slane %v147_v14, 2 }
 0x1f6   :  { %v131_v16 = vpop.xlane.xlu0 %130  ;;  %v149_v19 = vadd.f32 %v148_v15, %v147_v14 }
 0x1f7   :  { %v132_v17 = vrot.slane %v131_v16, 4 }
 0x1f8   :  { %v150_v22 = vrot.slane %v149_v19, 1 }
 0x1f9   :  { %v133_v18 = vadd.f32 %v132_v17, %v131_v16 }
 0x1fa   :  { %v151_v25 = vadd.f32 %v150_v22, %v149_v19 }
 0x1fb   :  { %v134_v20 = vrot.slane %v133_v18, 2 }
 0x1fd   :  { %v135_v21 = vadd.f32 %v134_v20, %v133_v18 }
 0x1ff   :  { %v136_v23 = vrot.slane %v135_v21, 1 }
 0x201   :  { %v137_v24 = vadd.f32 %v136_v23, %v135_v21 }
 0x203   :  { %185 = vpush %v137_v24 }
 0x204   :  { %187 = vpush %v151_v25 }
 0x234   :  { %s186_s13 = spop %185 }
 0x235   :  { %v139_v26 = vstv %s186_s13  ;;  %s188_s14 = spop %187 }
 0x236   :  { %140 = vst [vmem:[#allocation7] sm:$0xff] %v139_v26  ;;  %v153_v27 = vstv %s188_s14 }
 0x237   :  { %154 = vst [vmem:[#allocation8] sm:$0xff] %v153_v27 }
 0x238   :  { %254 = shalt.err (!%p251_p6)
}
 0x239   :  { %s255_s18 = scalar_lea.hbm %s378_s2, 128 }
 0x23a   :  { %p256_p7 = scmp.ne.s32.totalorder %s378_s2, %s255_s18  ;;  %p259_p8 = scmp.lt.u32.totalorder %s255_s18, %s378_s2 }
 0x23c   :  { %p261_p9 = pnand %p259_p8, %p256_p7 }
 0x23e   :  { %264 = shalt.err (!%p261_p9)
}
 0x23f   :  { %164 = dma.vmem_to_hbm [thread:$0]  %s162_s10, 128, %s378_s2, [#allocation4]  }
 0x240   :  { %s265_s25 = scalar_lea.vmem %s345_s12, 128  ;;  %p270_p11 = scmp.lt.s32.totalorder %s345_s12, %s345_s12 }
 0x241   :  { %p266_p10 = scmp.ne.s32.totalorder %s345_s12, %s265_s25  ;;  %p271_p12 = scmp.lt.s32.totalorder %s265_s25, %s265_s25 }
 0x243   :  { %p272_p13 = por %p271_p12, %p270_p11 }
 0x245   :  { %p273_p0 = pnand %p272_p13, %p266_p10 }
 0x247   :  { %276 = shalt.err (!%p273_p0)
}
 0x248   :  { %s277_s28 = scalar_lea.hbm %s379_s3, 128 }
 0x249   :  { %p278_p1 = scmp.ne.s32.totalorder %s379_s3, %s277_s28  ;;  %p281_p2 = scmp.lt.u32.totalorder %s277_s28, %s379_s3 }
 0x24b   :  { %p283_p3 = pnand %p281_p2, %p278_p1 }
 0x24d   :  { %286 = shalt.err (!%p283_p3)
}
 0x24e   :  { %174 = dma.vmem_to_hbm [thread:$0]  %s345_s12, 128, %s379_s3, [#allocation9]  }
 0x24f   :  { %291 = dma.done.wait [#allocation4], 128  }
 0x250   :  { %292 = vsyncadd [#allocation4], 4294967168 }
 0x251   :  { %293 = dma.done.wait [#allocation9], 128  }
 0x252   :  { %294 = vsyncadd [#allocation9], 4294967168 }
 0x253   :  { %181 = vsyncpa [#allocation3], 1 }
 0x254   :  { %182 = vsyncpa [#allocation6], 1 }
 0x255   :  { %183 = vsyncpa [#allocation4], 1 }
 0x256   :  { %184 = vsyncpa [#allocation9], 1 }

</bundles_post_ra>
